<compile_context>
chip_gen: v6e
topology: v6e:2x2x1
jax: 0.10.0
libtpu: 0.0.40
codegen_flags: <defaults>
</compile_context>

<pallas_src>
import jax
import jax.numpy as jnp
from jax.experimental import pallas as pl
from jax.experimental.pallas import tpu as pltpu


def _round_up(x, m):
    return -(-x // m) * m


# ----------------------------------------------------------------------------
# Fused kernel: conv-as-one-matmul (+bias+ReLU) -> MXU avg-pool -> Linear+ReLU
# ----------------------------------------------------------------------------
def _make_kernel(B, HW, TR, Cout, hidden):
    inv_hw = 1.0 / float(HW)

    def kernel(x_ref, wc_ref, bc_ref, pw_ref, pb_ref, raw_ref, feat_ref,
               psum_ref):
        # x_ref   : (TR, KP)      bf16  im2col rows for this tile (zero-padded)
        # wc_ref  : (KP, Cout)    bf16  conv weights, K = 9*Cin (zero-padded)
        # bc_ref  : (1, Cout)     f32   conv bias
        # pw_ref  : (Cout,hidden) f32   feature_projection weight
        # pb_ref  : (1, hidden)   f32   feature_projection bias
        # raw_ref : (B, Cout)           'raw_features' (pooled backbone feats)
        # feat_ref: (B, hidden)         'features'     (projected feats)
        # psum_ref: (B, Cout)     f32   VMEM pooled-sum accumulator
        c = pl.program_id(0)

        @pl.when(c == 0)
        def _init():
            psum_ref[...] = jnp.zeros_like(psum_ref)

        # --- 3x3 SAME conv (+bias+ReLU) as a single K=9*Cin matmul ----------
        acc = jnp.dot(x_ref[...], wc_ref[...],
                      preferred_element_type=jnp.float32)          # (TR, Cout)
        acc = jnp.maximum(acc + bc_ref[...], 0.0)

        # --- AdaptiveAvgPool2d((1,1)) on the MXU -----------------------------
        # Block-diagonal averaging matrix built in-kernel: row r belongs to
        # image b iff b*HW <= r < (b+1)*HW; zero-padded rows (r >= B*HW) fall
        # outside every image and contribute nothing.
        rows = c * TR + jax.lax.broadcasted_iota(jnp.int32, (B, TR), 1)
        lo = jax.lax.broadcasted_iota(jnp.int32, (B, TR), 0) * HW
        pool = jnp.where((rows >= lo) & (rows < lo + HW), inv_hw, 0.0)  # (B,TR)
        psum_ref[...] = psum_ref[...] + jnp.dot(
            pool, acc, preferred_element_type=jnp.float32)         # (B, Cout)

        # --- finalize: pooled features + Linear/ReLU projection (M = B) -----
        @pl.when(c == pl.num_programs(0) - 1)
        def _fin():
            pooled = psum_ref[...]
            raw_ref[...] = pooled.astype(raw_ref.dtype)
            proj = jnp.dot(pooled, pw_ref[...],
                           preferred_element_type=jnp.float32) + pb_ref[...]
            # Dropout is identity at inference.
            feat_ref[...] = jnp.maximum(proj, 0.0).astype(feat_ref.dtype)

    return kernel


# ----------------------------------------------------------------------------
# Wrapper
# ----------------------------------------------------------------------------
def cnn_image_encoder_forward(images_nchw, params, *, row_tile=256):
    """images_nchw: [B, Cin, H, W] float32 (PyTorch layout)."""
    x = jnp.transpose(images_nchw, (0, 2, 3, 1)).astype(jnp.float32)  # NHWC
    B, H, W, Cin = x.shape
    conv_w = params["conv_w"]                      # (3, 3, Cin, Cout) HWIO
    conv_b = params["conv_b"]                      # (Cout,)
    proj_w = params["proj_w"]                      # (Cout, hidden)
    proj_b = params["proj_b"]                      # (hidden,)
    Cout = conv_w.shape[-1]
    hidden = proj_w.shape[-1]
    HW = H * W

    # ---- wrapper-side im2col: lane-dense (rows, 9*Cin) layout, bf16 DMA ----
    K = 9 * Cin
    KP = _round_up(K, 8)
    xpad = jnp.pad(x, ((0, 0), (1, 1), (1, 1), (0, 0)))              # SAME pad
    taps = [xpad[:, kh:kh + H, kw:kw + W, :]
            for kh in range(3) for kw in range(3)]
    xcol = jnp.stack(taps, axis=3).reshape(B * HW, K)                # (R, 9*Cin)

    R = B * HW
    TR = _round_up(min(row_tile, _round_up(R, 8)), 8)
    n_chunks = pl.cdiv(R, TR)
    R_pad = n_chunks * TR
    xcol = jnp.pad(xcol, ((0, R_pad - R), (0, KP - K))).astype(jnp.bfloat16)

    wc = jnp.pad(conv_w.reshape(K, Cout),
                 ((0, KP - K), (0, 0))).astype(jnp.bfloat16)
    bc = conv_b.reshape(1, Cout).astype(jnp.float32)
    pw = proj_w.astype(jnp.float32)
    pb = proj_b.reshape(1, hidden).astype(jnp.float32)

    kernel = _make_kernel(B, HW, TR, Cout, hidden)

    flops = (2 * R_pad * KP * Cout          # conv matmul
             + 2 * B * R_pad * Cout         # pooling matmul
             + 2 * B * Cout * hidden)       # projection
    bytes_accessed = (xcol.size * 2 + wc.size * 2 + bc.size * 4 + pw.size * 4
                      + pb.size * 4 + B * Cout * 4 + B * hidden * 4)

    raw, feat = pl.pallas_call(
        kernel,
        out_shape=(jax.ShapeDtypeStruct((B, Cout), jnp.float32),
                   jax.ShapeDtypeStruct((B, hidden), jnp.float32)),
        grid_spec=pltpu.PrefetchScalarGridSpec(
            num_scalar_prefetch=0,
            grid=(n_chunks,),
            in_specs=[
                pl.BlockSpec((TR, KP), lambda c: (c, 0)),        # im2col tile
                pl.BlockSpec((KP, Cout), lambda c: (0, 0)),      # conv weight
                pl.BlockSpec((1, Cout), lambda c: (0, 0)),       # conv bias
                pl.BlockSpec((Cout, hidden), lambda c: (0, 0)),  # proj weight
                pl.BlockSpec((1, hidden), lambda c: (0, 0)),     # proj bias
            ],
            out_specs=(
                pl.BlockSpec((B, Cout), lambda c: (0, 0)),
                pl.BlockSpec((B, hidden), lambda c: (0, 0)),
            ),
            scratch_shapes=[pltpu.VMEM((B, Cout), jnp.float32)],
        ),
        compiler_params=pltpu.CompilerParams(
            dimension_semantics=("arbitrary",)),                 # reduction axis
        cost_estimate=pl.CostEstimate(flops=int(flops), transcendentals=0,
                                      bytes_accessed=int(bytes_accessed)),
    )(xcol, wc, bc, pw, pb)

    # classifier is None (num_classes=None) and return_logits defaults False.
    return {"features": feat, "raw_features": raw}


# ----------------------------------------------------------------------------
# Pure-JAX reference (same bf16 conv quantization, f32 accumulate)
# ----------------------------------------------------------------------------
def reference_forward(images_nchw, params):
    x = jnp.transpose(images_nchw, (0, 2, 3, 1)).astype(jnp.float32)
    y = jax.lax.conv_general_dilated(
        x.astype(jnp.bfloat16), params["conv_w"].astype(jnp.bfloat16),
        window_strides=(1, 1), padding="SAME",
        dimension_numbers=("NHWC", "HWIO", "NHWC"),
        preferred_element_type=jnp.float32)
    y = jnp.maximum(y + params["conv_b"], 0.0)
    pooled = jnp.mean(y, axis=(1, 2))
    feat = jnp.maximum(
        jnp.dot(pooled, params["proj_w"],
                precision=jax.lax.Precision.HIGHEST) + params["proj_b"], 0.0)
    return {"features": feat, "raw_features": pooled}


def init_params(key, cin=3, feature_dim=128, hidden_size=128):
    k1, k2, k3, k4 = jax.random.split(key, 4)
    conv_w = jax.random.normal(k1, (3, 3, cin, feature_dim), jnp.float32) * 0.1
    conv_b = jax.random.normal(k2, (feature_dim,), jnp.float32) * 0.01
    proj_w = jax.random.normal(k3, (feature_dim, hidden_size), jnp.float32) * 0.05
    proj_b = jax.random.normal(k4, (hidden_size,), jnp.float32) * 0.01
    return {"conv_w": conv_w, "conv_b": conv_b,
            "proj_w": proj_w, "proj_b": proj_b}


if __name__ == "__main__":
    key = jax.random.PRNGKey(0)
    k_img, k_par = jax.random.split(key)

    B, Cin, H, W = 2, 3, 16, 16
    feature_dim, hidden_size = 128, 128

    images = jax.random.normal(k_img, (B, Cin, H, W), jnp.float32)
    params = init_params(k_par, cin=Cin, feature_dim=feature_dim,
                         hidden_size=hidden_size)

    out = cnn_image_encoder_forward(images, params)
    jax.block_until_ready(out["features"])
    jax.block_until_ready(out["raw_features"])

    ref = reference_forward(images, params)
    assert out["features"].shape == (B, hidden_size)
    assert out["raw_features"].shape == (B, feature_dim)
    assert jnp.allclose(out["raw_features"], ref["raw_features"],
                        atol=5e-3, rtol=5e-3), "raw_features mismatch"
    assert jnp.allclose(out["features"], ref["features"],
                        atol=5e-3, rtol=5e-3), "features mismatch"

    print("KERNEL_OK")
</pallas_src>

<mosaic_0001>
module attributes {stable_mosaic.version = 11 : i64} {
  func.func @kernel(%arg0: i32, %arg1: memref<256x32xbf16, #tpu.memory_space<vmem>>, %arg2: memref<32x128xbf16, #tpu.memory_space<vmem>>, %arg3: memref<1x128xf32, #tpu.memory_space<vmem>>, %arg4: memref<128x128xf32, #tpu.memory_space<vmem>>, %arg5: memref<1x128xf32, #tpu.memory_space<vmem>>, %arg6: memref<2x128xf32, #tpu.memory_space<vmem>>, %arg7: memref<2x128xf32, #tpu.memory_space<vmem>>, %arg8: memref<2x128xf32, #tpu.memory_space<vmem>>) attributes {dimension_semantics = [#tpu.dimension_semantics<arbitrary>], iteration_bounds = array<i64: 2>, scalar_prefetch = 0 : i64, scratch_operands = 1 : i64, tpu.core_type = #tpu.core_type<tc>, window_params = [{transform_indices = @transform_0, window_bounds = array<i64: 256, 32>}, {pipeline_mode = #tpu.pipeline_mode<synchronous>, transform_indices = @transform_1, window_bounds = array<i64: 32, 128>}, {pipeline_mode = #tpu.pipeline_mode<synchronous>, transform_indices = @transform_2, window_bounds = array<i64: 1, 128>}, {pipeline_mode = #tpu.pipeline_mode<synchronous>, transform_indices = @transform_3, window_bounds = array<i64: 128, 128>}, {pipeline_mode = #tpu.pipeline_mode<synchronous>, transform_indices = @transform_4, window_bounds = array<i64: 1, 128>}, {pipeline_mode = #tpu.pipeline_mode<synchronous>, transform_indices = @transform_5, window_bounds = array<i64: 2, 128>}, {pipeline_mode = #tpu.pipeline_mode<synchronous>, transform_indices = @transform_6, window_bounds = array<i64: 2, 128>}]} {
    %c0_i32 = arith.constant 0 : i32
    %0 = arith.cmpi eq, %arg0, %c0_i32 : i32
    %1 = arith.extui %0 : i1 to i32
    %c0_i32_0 = arith.constant 0 : i32
    %2 = arith.cmpi ne, %1, %c0_i32_0 : i32
    scf.if %2 {
      %cst_17 = arith.constant 0.000000e+00 : f32
      %33 = vector.broadcast %cst_17 : f32 to vector<2x128xf32>
      %c0_18 = arith.constant 0 : index
      %c0_19 = arith.constant 0 : index
      %34 = vector.load %arg8[%c0_18, %c0_19] : memref<2x128xf32, #tpu.memory_space<vmem>>, vector<2x128xf32>
      tpu.vector_store %arg8[%c0_18, %c0_19], %33 {strides = array<i32>} : memref<2x128xf32, #tpu.memory_space<vmem>>, vector<2x128xf32>,
    } else {
    }
    %c0 = arith.constant 0 : index
    %c0_1 = arith.constant 0 : index
    %3 = vector.load %arg1[%c0, %c0_1] : memref<256x32xbf16, #tpu.memory_space<vmem>>, vector<256x32xbf16>
    %c0_2 = arith.constant 0 : index
    %c0_3 = arith.constant 0 : index
    %4 = vector.load %arg2[%c0_2, %c0_3] : memref<32x128xbf16, #tpu.memory_space<vmem>>, vector<32x128xbf16>
    %cst = arith.constant dense<0.000000e+00> : vector<256x128xf32>
    %5 = tpu.matmul %3, %4, %cst {dimension_numbers = #tpu.dot_dimension_numbers<[1], [0], [0], [1], [0, 0, 1, 1], [], []>} : vector<256x32xbf16>, vector<32x128xbf16>, vector<256x128xf32> -> vector<256x128xf32>
    %c0_4 = arith.constant 0 : index
    %c0_5 = arith.constant 0 : index
    %6 = vector.load %arg3[%c0_4, %c0_5] : memref<1x128xf32, #tpu.memory_space<vmem>>, vector<1x128xf32>
    %7 = vector.broadcast %6 : vector<1x128xf32> to vector<256x128xf32>
    %8 = arith.addf %5, %7 : vector<256x128xf32>
    %cst_6 = arith.constant 0.000000e+00 : f32
    %9 = vector.broadcast %cst_6 : f32 to vector<256x128xf32>
    %10 = arith.maximumf %8, %9 : vector<256x128xf32>
    %c256_i32 = arith.constant 256 : i32
    %11 = arith.muli %arg0, %c256_i32 : i32
    %12 = tpu.iota {dimensions = array<i32: 1>} : vector<2x256xi32>
    %13 = vector.broadcast %11 : i32 to vector<2x256xi32>
    %14 = arith.addi %13, %12 : vector<2x256xi32>
    %15 = tpu.iota {dimensions = array<i32: 0>} : vector<2x256xi32>
    %c256_i32_7 = arith.constant 256 : i32
    %16 = vector.broadcast %c256_i32_7 : i32 to vector<2x256xi32>
    %17 = arith.muli %15, %16 : vector<2x256xi32>
    %18 = arith.cmpi sge, %14, %17 : vector<2x256xi32>
    %c256_i32_8 = arith.constant 256 : i32
    %19 = vector.broadcast %c256_i32_8 : i32 to vector<2x256xi32>
    %20 = arith.addi %17, %19 : vector<2x256xi32>
    %21 = arith.cmpi slt, %14, %20 : vector<2x256xi32>
    %22 = arith.andi %18, %21 : vector<2x256xi1>
    %cst_9 = arith.constant 3.906250e-03 : f32
    %cst_10 = arith.constant 0.000000e+00 : f32
    %23 = vector.broadcast %cst_9 : f32 to vector<2x256xf32>
    %24 = vector.broadcast %cst_10 : f32 to vector<2x256xf32>
    %25 = arith.select %22, %23, %24 : vector<2x256xi1>, vector<2x256xf32>
    %c0_11 = arith.constant 0 : index
    %c0_12 = arith.constant 0 : index
    %26 = vector.load %arg8[%c0_11, %c0_12] : memref<2x128xf32, #tpu.memory_space<vmem>>, vector<2x128xf32>
    %cst_13 = arith.constant dense<0.000000e+00> : vector<2x128xf32>
    %27 = tpu.matmul %25, %10, %cst_13 {dimension_numbers = #tpu.dot_dimension_numbers<[1], [0], [0], [1], [0, 0, 1, 1], [], []>} : vector<2x256xf32>, vector<256x128xf32>, vector<2x128xf32> -> vector<2x128xf32>
    %28 = arith.addf %26, %27 : vector<2x128xf32>
    %c0_14 = arith.constant 0 : index
    %c0_15 = arith.constant 0 : index
    %29 = vector.load %arg8[%c0_14, %c0_15] : memref<2x128xf32, #tpu.memory_space<vmem>>, vector<2x128xf32>
    tpu.vector_store %arg8[%c0_14, %c0_15], %28 {strides = array<i32>} : memref<2x128xf32, #tpu.memory_space<vmem>>, vector<2x128xf32>,
    %c1_i32 = arith.constant 1 : i32
    %30 = arith.cmpi eq, %arg0, %c1_i32 : i32
    %31 = arith.extui %30 : i1 to i32
    %c0_i32_16 = arith.constant 0 : i32
    %32 = arith.cmpi ne, %31, %c0_i32_16 : i32
    scf.if %32 {
      %c0_17 = arith.constant 0 : index
      %c0_18 = arith.constant 0 : index
      %33 = vector.load %arg8[%c0_17, %c0_18] : memref<2x128xf32, #tpu.memory_space<vmem>>, vector<2x128xf32>
      %c0_19 = arith.constant 0 : index
      %c0_20 = arith.constant 0 : index
      %34 = vector.load %arg6[%c0_19, %c0_20] : memref<2x128xf32, #tpu.memory_space<vmem>>, vector<2x128xf32>
      tpu.vector_store %arg6[%c0_19, %c0_20], %33 {strides = array<i32>} : memref<2x128xf32, #tpu.memory_space<vmem>>, vector<2x128xf32>,
      %c0_21 = arith.constant 0 : index
      %c0_22 = arith.constant 0 : index
      %35 = vector.load %arg4[%c0_21, %c0_22] : memref<128x128xf32, #tpu.memory_space<vmem>>, vector<128x128xf32>
      %cst_23 = arith.constant dense<0.000000e+00> : vector<2x128xf32>
      %36 = tpu.matmul %33, %35, %cst_23 {dimension_numbers = #tpu.dot_dimension_numbers<[1], [0], [0], [1], [0, 0, 1, 1], [], []>} : vector<2x128xf32>, vector<128x128xf32>, vector<2x128xf32> -> vector<2x128xf32>
      %c0_24 = arith.constant 0 : index
      %c0_25 = arith.constant 0 : index
      %37 = vector.load %arg5[%c0_24, %c0_25] : memref<1x128xf32, #tpu.memory_space<vmem>>, vector<1x128xf32>
      %38 = vector.broadcast %37 : vector<1x128xf32> to vector<2x128xf32>
      %39 = arith.addf %36, %38 : vector<2x128xf32>
      %cst_26 = arith.constant 0.000000e+00 : f32
      %40 = vector.broadcast %cst_26 : f32 to vector<2x128xf32>
      %41 = arith.maximumf %39, %40 : vector<2x128xf32>
      %c0_27 = arith.constant 0 : index
      %c0_28 = arith.constant 0 : index
      %42 = vector.load %arg7[%c0_27, %c0_28] : memref<2x128xf32, #tpu.memory_space<vmem>>, vector<2x128xf32>
      tpu.vector_store %arg7[%c0_27, %c0_28], %41 {strides = array<i32>} : memref<2x128xf32, #tpu.memory_space<vmem>>, vector<2x128xf32>,
    } else {
    }
    return
  }
  func.func @transform_0(%arg0: i32) -> (i32, i32) {
    %c0_i32 = arith.constant 0 : i32
    %c0_i32_0 = arith.constant 0 : i32
    return %arg0, %c0_i32 : i32, i32
  }
  func.func @transform_1(%arg0: i32) -> (i32, i32) {
    %c0_i32 = arith.constant 0 : i32
    %c0_i32_0 = arith.constant 0 : i32
    %c0_i32_1 = arith.constant 0 : i32
    return %c0_i32, %c0_i32_0 : i32, i32
  }
  func.func @transform_2(%arg0: i32) -> (i32, i32) {
    %c0_i32 = arith.constant 0 : i32
    %c0_i32_0 = arith.constant 0 : i32
    %c0_i32_1 = arith.constant 0 : i32
    return %c0_i32, %c0_i32_0 : i32, i32
  }
  func.func @transform_3(%arg0: i32) -> (i32, i32) {
    %c0_i32 = arith.constant 0 : i32
    %c0_i32_0 = arith.constant 0 : i32
    %c0_i32_1 = arith.constant 0 : i32
    return %c0_i32, %c0_i32_0 : i32, i32
  }
  func.func @transform_4(%arg0: i32) -> (i32, i32) {
    %c0_i32 = arith.constant 0 : i32
    %c0_i32_0 = arith.constant 0 : i32
    %c0_i32_1 = arith.constant 0 : i32
    return %c0_i32, %c0_i32_0 : i32, i32
  }
  func.func @transform_5(%arg0: i32) -> (i32, i32) {
    %c0_i32 = arith.constant 0 : i32
    %c0_i32_0 = arith.constant 0 : i32
    %c0_i32_1 = arith.constant 0 : i32
    return %c0_i32, %c0_i32_0 : i32, i32
  }
  func.func @transform_6(%arg0: i32) -> (i32, i32) {
    %c0_i32 = arith.constant 0 : i32
    %c0_i32_0 = arith.constant 0 : i32
    %c0_i32_1 = arith.constant 0 : i32
    return %c0_i32, %c0_i32_0 : i32, i32
  }
}

</mosaic_0001>

<bundles_post_ra>
// kernel: tpu_custom_call.1
= control target key start
LH: loop header
LB: loop body
LE: loop exit
PB: predicated region body
PF: predicated region fallthrough
CT: control target
= control target key end

     0   :  { %12 = vsyncpa [#allocation4], 0  ;;  %s1451_s0 = inlined_call_operand.vmem [shape: bf16[512,32], index: 0, kind: input, shape index: {}]   ;;  %s1452_s1 = inlined_call_operand.vmem [shape: bf16[32,128], index: 1, kind: input, shape index: {}]   ;;  %s1453_s2 = inlined_call_operand.vmem [shape: f32[1,128], index: 2, kind: input, shape index: {}]   ;;  %s1454_s3 = inlined_call_operand.vmem [shape: f32[128,128], index: 3, kind: input, shape index: {}]   ;;  %s1455_s4 = inlined_call_operand.vmem [shape: f32[1,128], index: 4, kind: input, shape index: {}]   ;;  %s1456_s5 = inlined_call_operand.hbm [shape: f32[2,128], index: 5, kind: output, shape index: {0}]   ;;  %s1457_s6 = inlined_call_operand.hbm [shape: f32[2,128], index: 6, kind: output, shape index: {1}]  }
   0x1   :  { %13 = vsyncpa [#allocation6], 0  ;;  %s1230_s21 = smov 0  }
   0x2 LB: > { %s1236_s22 = sadd.s32 4294967295, %s1187_s21   ;;  %p886_p0 = scmp.ge.s32.totalorder %s1187_s21, 1  ;;  %s1187_s21 = sphi %s1230_s21, %s19_s21  }
   0x3   : > { %p208_p1 = scmp.lt.s32.totalorder %s1187_s21, 3 }
   0x5   : > { %p209_p2 = pnand %p886_p0, %p208_p1 }
   0x6   : > { %s887_s23 = sshll.u32 (!%p209_p2), %s1236_s22, 5  ;;  %p889_p4 = scmp.ne.s32.totalorder (!%p209_p2), %s1236_s22, 0 }
   0x7   : > { %212 = sbr.rel (%p209_p2) target bundleno = 744 (0x2e8), region = 40  ;;  %p234_p3 = scmp.lt.s32.totalorder (!%p209_p2), %s887_s23, 63 }
   0xc   : > { %s1461_s23 = smov (!%p234_p3, %s887_s23), 63  ;;  %243 = sbr.rel (%p889_p4) target bundleno = 19 (0x13), region = 44 }
   0xd   : > { %s888_s24 = sshll.u32 %s1461_s23, 2 }
   0xe   : > { %s1244_s27 = scalar_lea.vmem %s1451_s0, %s888_s24 }
  0x11   : > { %v1189_v0 = vmov 0.0  }
  0x12   : > { %244 = vst [vmem:[#allocation2] sm:$0x3] %v1189_v0 }
  0x13 PF: > { %v1107_v1 = vld [vmem:[%s1452_s1 + $0x8] sm:$0xff]   ;;  %v1108_v2 = vld [vmem:[%s1452_s1] sm:$0xff]   ;;  %vm380_vm0 = vcmask 261120   ;;  %v1113_v7 = vld [vmem:[%s1244_s27 + $0x10] sm:$0xff]   ;;  %v623_v19 = vlaneseq  ;;  %s925_s8 = sshll.u32 %s1236_s22, 8  ;;  %v1190_v28 = vmov 0.00390625  }
  0x14   : > { %1006 = vmatprep.subr.bf16.mxu0 %v1107_v1  ;;  %1077 = vmatprep.subr.bf16.mxu1 %v1107_v1  ;;  %v1109_v3 = vld [vmem:[%s1244_s27] sm:$0xff]   ;;  %v1111_v5 = vld [vmem:[%s1244_s27 + $0x8] sm:$0xff]   ;;  %v1114_v8 = vld [vmem:[%s1244_s27 + $0x50] sm:$0xff]   ;;  %v626_v24 = vstv %s925_s8  ;;  %p928_p5 = scmp.ne.s32.totalorder %s1236_s22, 1 }
  0x15   : > { %1007 = vmatpush3.bf16.msra.mxu0 %v1107_v1  ;;  %1079 = vmatpush3.bf16.msra.mxu1 %v1107_v1  ;;  %v1110_v4 = vld [vmem:[%s1244_s27 + $0x40] sm:$0xff]   ;;  %v1112_v6 = vld [vmem:[%s1244_s27 + $0x48] sm:$0xff]   ;;  %v1115_v9 = vld [vmem:[%s1244_s27 + $0x18] sm:$0xff]   ;;  %v624_v20 = vand.u32 127, %v623_v19  ;;  %v630_v21 = vshrl.u32 %v623_v19, 7 }
  0x16   : > { %1008 = vmatprep.subr.bf16.mxu0 %v1108_v2  ;;  %1078 = vmatprep.subr.bf16.mxu1 %v1108_v2  ;;  %v1116_v10 = vld [vmem:[%s1244_s27 + $0x58] sm:$0xff]   ;;  %v1117_v11 = vld [vmem:[%s1244_s27 + $0x20] sm:$0xff]   ;;  %v1119_v13 = vld [vmem:[%s1244_s27 + $0x28] sm:$0xff]  }
  0x17   : > { %1010 = vmatprep.mubr.msk.bf16.mxu0 %vm380_vm0, %v1109_v3  ;;  %1026 = vmatprep.mubr.msk.bf16.mxu1 %vm380_vm0, %v1110_v4  ;;  %v1118_v12 = vld [vmem:[%s1244_s27 + $0x60] sm:$0xff]   ;;  %v1120_v14 = vld [vmem:[%s1244_s27 + $0x68] sm:$0xff]   ;;  %v1121_v15 = vld [vmem:[%s1244_s27 + $0x30] sm:$0xff]   ;;  %v625_v22 = vadd.s32 128, %v624_v20  ;;  %v631_v23 = vmul.u32 256, %v630_v21  ;;  %v627_v27 = vadd.s32 %v626_v24, %v624_v20 }
  0x18   : > { %v1122_v16 = vld [vmem:[%s1244_s27 + $0x70] sm:$0xff]   ;;  %v1123_v17 = vld [vmem:[%s1244_s27 + $0x38] sm:$0xff]   ;;  %v1322_v58 = vld [vmem:[%s1453_s2] ss:$0 sm:$0xff] }
  0x19   : > { %1009 = vmatpush3.bf16.msra.mxu0 %v1108_v2  ;;  %1080 = vmatpush3.bf16.msra.mxu1 %v1108_v2  ;;  %v1124_v18 = vld [vmem:[%s1244_s27 + $0x78] sm:$0xff]   ;;  %v628_v25 = vadd.s32 %v626_v24, %v625_v22  ;;  %v634_v26 = vadd.s32 256, %v631_v23  ;;  %vm632_vm5 = vcmp.ge.s32.totalorder %v627_v27, %v631_v23 }
  0x1b   : > { %vm633_vm1 = vcmp.ge.s32.totalorder %v628_v25, %v631_v23  ;;  %vm636_vm2 = vcmp.lt.s32.totalorder %v628_v25, %v634_v26  ;;  %vm635_vm3 = vcmp.lt.s32.totalorder %v627_v27, %v634_v26 }
  0x1c   : > { %1011 = vmatmul.mubr.msk.bf16.vlgmr.msra.gmra.mxu0 %vm380_vm0, %v1111_v5  ;;  %1027 = vmatmul.mubr.msk.bf16.vlgmr.msra.gmra.mxu1 %vm380_vm0, %v1112_v6  ;;  %vm638_vm4 = vmand %vm633_vm1, %vm636_vm2 }
  0x1d   : > { %1014 = vmatprep.mubr.msk.bf16.mxu0 %vm380_vm0, %v1113_v7  ;;  %1030 = vmatprep.mubr.msk.bf16.mxu1 %vm380_vm0, %v1114_v8  ;;  %vm1287_vm6 = vmand %vm632_vm5, %vm635_vm3 }
  0x24   : > { %1015 = vmatmul.mubr.msk.bf16.gmra.mxu0 %vm380_vm0, %v1115_v9  ;;  %1031 = vmatmul.mubr.msk.bf16.gmra.mxu1 %vm380_vm0, %v1116_v10 }
  0x25   : > { %1018 = vmatprep.mubr.msk.bf16.mxu0 %vm380_vm0, %v1117_v11  ;;  %1034 = vmatprep.mubr.msk.bf16.mxu1 %vm380_vm0, %v1118_v12 }
  0x2c   : > { %1019 = vmatmul.mubr.msk.bf16.gmra.mxu0 %vm380_vm0, %v1119_v13  ;;  %1035 = vmatmul.mubr.msk.bf16.gmra.mxu1 %vm380_vm0, %v1120_v14 }
  0x2d   : > { %1022 = vmatprep.mubr.msk.bf16.mxu0 %vm380_vm0, %v1121_v15  ;;  %1038 = vmatprep.mubr.msk.bf16.mxu1 %vm380_vm0, %v1122_v16 }
  0x34   : > { %1023 = vmatmul.mubr.msk.bf16.gmra.mxu0 %vm380_vm0, %v1123_v17  ;;  %1039 = vmatmul.mubr.msk.bf16.gmra.mxu1 %vm380_vm0, %v1124_v18 }
  0x35   : > { %926 = vmatprep.mubr.msk.f32.mxu1 %vm638_vm4, %v1190_v28 }
  0xdc   : > { %v1291_v30 = vpop.f32.mrf.mxu0  ;;  %v1293_v31 = vpop.f32.mrf.mxu1 }
  0xde   : > { %v1295_v32 = vpop.f32.mrf.mxu0  ;;  %v1297_v33 = vpop.f32.mrf.mxu1 }
  0xe0   : > { %v1299_v34 = vpop.f32.mrf.mxu0  ;;  %v1301_v35 = vpop.f32.mrf.mxu1 }
  0xe2   : > { %v1303_v36 = vpop.f32.mrf.mxu0  ;;  %v1305_v37 = vpop.f32.mrf.mxu1 }
  0xe4   : > { %v1307_v38 = vpop.f32.mrf.mxu0  ;;  %v1309_v39 = vpop.f32.mrf.mxu1 }
  0xe6   : > { %v1311_v40 = vpop.f32.mrf.mxu0  ;;  %v1313_v41 = vpop.f32.mrf.mxu1 }
  0xe8   : > { %v1017_v42 = vpop.f32.mrf.mxu0  ;;  %v1033_v43 = vpop.f32.mrf.mxu1 }
  0xe9   : > { %v555_v27 = vadd.f32 %v1033_v43, %v1322_v58 }
  0xea   : > { %v1315_v44 = vpop.f32.mrf.mxu0  ;;  %v1317_v45 = vpop.f32.mrf.mxu1 }
  0xeb   : > { %v547_v43 = vadd.f32 %v1322_v58, %v1317_v45 }
  0xec   : > { %v1020_v46 = vpop.f32.mrf.mxu0  ;;  %v1036_v47 = vpop.f32.mrf.mxu1 }
  0xed   : > { %v568_v15 = vadd.f32 %v1036_v47, %v1322_v58  ;;  %v504_v17 = vadd.f32 %v1020_v46, %v1322_v58  ;;  %v491_v47 = vadd.f32 %v1017_v42, %v1322_v58  ;;  %v483_v42 = vadd.f32 %v1322_v58, %v1315_v44 }
  0xee   : > { %v495_v48 = vpop.f32.mrf.mxu0  ;;  %v559_v49 = vpop.f32.mrf.mxu1  ;;  %v611_v45 = vmax.f32 %v547_v43, 0.0 }
  0xef   : > { %v616_v23 = vmax.f32 %v568_v15, 0.0  ;;  %v560_v24 = vadd.f32 %v1322_v58, %v559_v49  ;;  %v600_v25 = vmax.f32 %v504_v17, 0.0  ;;  %v496_v26 = vadd.f32 %v1322_v58, %v495_v48 }
  0xf0   : > { %v1021_v50 = vpop.f32.mrf.mxu0  ;;  %v1037_v51 = vpop.f32.mrf.mxu1  ;;  %v488_v49 = vadd.f32 %v1307_v38, %v1322_v58  ;;  %v613_v48 = vmax.f32 %v555_v27, 0.0  ;;  %v480_v38 = vadd.f32 %v1322_v58, %v1311_v40  ;;  %v595_v44 = vmax.f32 %v483_v42, 0.0 }
  0xf1   : > { %v571_v11 = vadd.f32 %v1037_v51, %v1322_v58  ;;  %v507_v13 = vadd.f32 %v1021_v50, %v1322_v58  ;;  %v552_v51 = vadd.f32 %v1309_v39, %v1322_v58  ;;  %v544_v39 = vadd.f32 %v1322_v58, %v1313_v41 }
  0xf2   : > { %v498_v52 = vpop.f32.mrf.mxu0  ;;  %v562_v53 = vpop.f32.mrf.mxu1  ;;  %v594_v40 = vmax.f32 %v480_v38, 0.0 }
  0xf3   : > { %v617_v19 = vmax.f32 %v571_v11, 0.0  ;;  %v563_v20 = vadd.f32 %v1322_v58, %v562_v53  ;;  %v601_v21 = vmax.f32 %v507_v13, 0.0  ;;  %v499_v22 = vadd.f32 %v1322_v58, %v498_v52 }
  0xf4   : > { %v1024_v54 = vpop.f32.mrf.mxu0  ;;  %v1040_v55 = vpop.f32.mrf.mxu1  ;;  %v614_v52 = vmax.f32 %v560_v24, 0.0  ;;  %v598_v53 = vmax.f32 %v496_v26, 0.0  ;;  %v610_v41 = vmax.f32 %v544_v39, 0.0 }
  0xf5   : > { %v584_v61 = vadd.f32 %v1040_v55, %v1322_v58  ;;  %v520_v0 = vadd.f32 %v1024_v54, %v1322_v58  ;;  %v615_v46 = vmax.f32 %v563_v20, 0.0  ;;  %v599_v50 = vmax.f32 %v499_v22, 0.0 }
  0xf6   : > { %v511_v56 = vpop.f32.mrf.mxu0  ;;  %v575_v57 = vpop.f32.mrf.mxu1  ;;  %v597_v54 = vmax.f32 %v491_v47, 0.0  ;;  %v612_v55 = vmax.f32 %v552_v51, 0.0 }
  0xf7   : > { %v620_v7 = vmax.f32 %v584_v61, 0.0  ;;  %v576_v8 = vadd.f32 %v1322_v58, %v575_v57  ;;  %v604_v9 = vmax.f32 %v520_v0, 0.0  ;;  %v512_v10 = vadd.f32 %v1322_v58, %v511_v56 }
  0xf8   : > { %v1025_v59 = vpop.f32.mrf.mxu0  ;;  %v1041_v60 = vpop.f32.mrf.mxu1  ;;  %v596_v56 = vmax.f32 %v488_v49, 0.0  ;;  %v539_v57 = vadd.f32 %v1301_v35, %v1322_v58  ;;  %v472_v61 = vadd.f32 %v1291_v30, %v1322_v58  ;;  %v531_v35 = vadd.f32 %v1322_v58, %v1305_v37 }
  0xf9   : > { %v523_v62 = vadd.f32 %v1025_v59, %v1322_v58  ;;  %v587_v63 = vadd.f32 %v1041_v60, %v1322_v58  ;;  %v618_v16 = vmax.f32 %v576_v8, 0.0  ;;  %v602_v18 = vmax.f32 %v512_v10, 0.0 }
  0xfa   : > { %v514_v1 = vpop.f32.mrf.mxu0  ;;  %v578_v2 = vpop.f32.mrf.mxu1  ;;  %v475_v59 = vadd.f32 %v1299_v34, %v1322_v58  ;;  %v536_v60 = vadd.f32 %v1293_v31, %v1322_v58  ;;  %v467_v34 = vadd.f32 %v1322_v58, %v1303_v36  ;;  %v528_v31 = vadd.f32 %v1322_v58, %v1297_v33  ;;  %v641_v36 = vld [vmem:[#allocation2] sm:$0x3] }
  0xfb   : > { %v605_v3 = vmax.f32 %v523_v62, 0.0  ;;  %v621_v4 = vmax.f32 %v587_v63, 0.0  ;;  %v579_v5 = vadd.f32 %v1322_v58, %v578_v2  ;;  %v515_v6 = vadd.f32 %v1322_v58, %v514_v1 }
  0xfc   : > { %v609_v62 = vmax.f32 %v539_v57, 0.0  ;;  %v593_v63 = vmax.f32 %v475_v59, 0.0  ;;  %v608_v0 = vmax.f32 %v536_v60, 0.0  ;;  %v592_v1 = vmax.f32 %v472_v61, 0.0 }
  0xfd   : > { %954 = vmatprep.subr.mxu1 %v621_v4  ;;  %v619_v12 = vmax.f32 %v579_v5, 0.0  ;;  %v603_v14 = vmax.f32 %v515_v6, 0.0  ;;  %v464_v30 = vadd.f32 %v1322_v58, %v1295_v32  ;;  %v607_v2 = vmax.f32 %v531_v35, 0.0 }
  0xfe   : > { %955 = vmatpush3.msra.mxu1 %v605_v3  ;;  %v591_v3 = vmax.f32 %v467_v34, 0.0  ;;  %v606_v37 = vmax.f32 %v528_v31, 0.0 }
  0xff   : > { %956 = vmatprep.subr.mxu1 %v620_v7  ;;  %v590_v4 = vmax.f32 %v464_v30, 0.0 }
 0x100   : > { %957 = vmatpush3.msra.mxu1 %v604_v9 }
 0x101   : > { %958 = vmatprep.subr.mxu1 %v619_v12 }
 0x102   : > { %959 = vmatpush3.msra.mxu1 %v603_v14 }
 0x103   : > { %960 = vmatprep.subr.mxu1 %v618_v16 }
 0x104   : > { %961 = vmatpush3.msra.mxu1 %v602_v18 }
 0x105   : > { %962 = vmatprep.subr.mxu1 %v617_v19 }
 0x106   : > { %963 = vmatpush3.msra.mxu1 %v601_v21 }
 0x107   : > { %964 = vmatprep.subr.mxu1 %v616_v23 }
 0x108   : > { %965 = vmatpush3.msra.mxu1 %v600_v25 }
 0x109   : > { %966 = vmatprep.subr.mxu1 %v615_v46 }
 0x10a   : > { %967 = vmatpush3.msra.mxu1 %v599_v50 }
 0x10b   : > { %968 = vmatprep.subr.mxu1 %v614_v52 }
 0x10c   : > { %969 = vmatpush3.msra.mxu1 %v598_v53 }
 0x10d   : > { %970 = vmatprep.subr.mxu1 %v613_v48 }
 0x10e   : > { %971 = vmatpush3.msra.mxu1 %v597_v54 }
 0x10f   : > { %972 = vmatprep.subr.mxu1 %v612_v55 }
 0x110   : > { %973 = vmatpush3.msra.mxu1 %v596_v56 }
 0x111   : > { %974 = vmatprep.subr.mxu1 %v611_v45 }
 0x112   : > { %975 = vmatpush3.msra.mxu1 %v595_v44 }
 0x113   : > { %976 = vmatprep.subr.mxu1 %v610_v41 }
 0x114   : > { %977 = vmatpush3.msra.mxu1 %v594_v40 }
 0x115   : > { %978 = vmatprep.subr.mxu1 %v609_v62 }
 0x116   : > { %979 = vmatpush3.msra.mxu1 %v593_v63 }
 0x117   : > { %980 = vmatprep.subr.mxu1 %v608_v0 }
 0x118   : > { %981 = vmatpush3.msra.mxu1 %v592_v1 }
 0x119   : > { %982 = vmatprep.subr.mxu1 %v607_v2 }
 0x11a   : > { %983 = vmatpush3.msra.mxu1 %v591_v3 }
 0x11b   : > { %984 = vmatprep.subr.mxu1 %v606_v37 }
 0x11c   : > { %985 = vmatpush3.msra.mxu1 %v590_v4 }
 0x11d   : > { %927 = vmatmul.mubr.msk.f32.vlgmr.msra.gmra.mxu1 %vm1287_vm6, %v1190_v28 }
 0x1dd   : > { %v986_v33 = vpop.f32.mrf.mxu1 }
 0x1df   : > { %v987_v5 = vpop.f32.mrf.mxu1 }
 0x1e0   : > { %v988_v6 = vadd.f32 %v987_v5, %v986_v33  ;;  %717 = sbr.rel (%p928_p5) target bundleno = 716 (0x2cc), region = 48 }
 0x1e2   : > { %v712_v32 = vadd.f32 %v988_v6, %v641_v36 }
 0x1e4   : > { %713 = vst [vmem:[#allocation2] sm:$0x3] %v712_v32 }
 0x1e5   : > { %v735_v58 = vld [vmem:[%s1454_s3 + $0x78] sm:$0xff]  ;;  %v1191_v7 = vmov 0.0   ;;  %v734_v29 = vld [vmem:[%s1454_s3 + $0x70] sm:$0xff]  ;;  %vm1192_vm7 = vmmov 0   ;;  %v733_v28 = vld [vmem:[%s1454_s3 + $0x68] sm:$0xff] }
 0x1e6   : > { %1042 = vmatprep.subr.mxu0 %v1191_v7  ;;  %1074 = vmatprep.mubr.msk.f32.mxu0 %vm1192_vm7, %v1191_v7  ;;  %v732_v8 = vld [vmem:[%s1454_s3 + $0x60] sm:$0xff]  ;;  %v731_v10 = vld [vmem:[%s1454_s3 + $0x58] sm:$0xff]  ;;  %v730_v11 = vld [vmem:[%s1454_s3 + $0x50] sm:$0xff] }
 0x1e7   : > { %1043 = vmatpush3.msra.mxu0 %v735_v58  ;;  %v729_v12 = vld [vmem:[%s1454_s3 + $0x48] sm:$0xff]  ;;  %v728_v13 = vld [vmem:[%s1454_s3 + $0x40] sm:$0xff]  ;;  %v727_v14 = vld [vmem:[%s1454_s3 + $0x38] sm:$0xff] }
 0x1e8   : > { %1044 = vmatprep.subr.mxu0 %v1191_v7  ;;  %v726_v15 = vld [vmem:[%s1454_s3 + $0x30] sm:$0xff]  ;;  %v725_v16 = vld [vmem:[%s1454_s3 + $0x28] sm:$0xff]  ;;  %v724_v17 = vld [vmem:[%s1454_s3 + $0x20] sm:$0xff] }
 0x1e9   : > { %1045 = vmatpush3.msra.mxu0 %v734_v29  ;;  %v723_v18 = vld [vmem:[%s1454_s3 + $0x18] sm:$0xff]  ;;  %v722_v19 = vld [vmem:[%s1454_s3 + $0x10] sm:$0xff]  ;;  %v721_v20 = vld [vmem:[%s1454_s3 + $0x8] sm:$0xff] }
 0x1ea   : > { %1046 = vmatprep.subr.mxu0 %v1191_v7  ;;  %v720_v21 = vld [vmem:[%s1454_s3] sm:$0xff] }
 0x1eb   : > { %v718_v9 = vld [vmem:[#allocation2] sm:$0x3]  ;;  %1047 = vmatpush3.msra.mxu0 %v733_v28 }
 0x1ec   : > { %719 = vst [vmem:[#allocation3] sm:$0x3] %v718_v9  ;;  %1048 = vmatprep.subr.mxu0 %v1191_v7  ;;  %v929_v22 = vld [vmem:[%s1455_s4] ss:$0 sm:$0xff] }
 0x1ed   : > { %1049 = vmatpush3.msra.mxu0 %v732_v8 }
 0x1ee   : > { %1050 = vmatprep.subr.mxu0 %v1191_v7 }
 0x1ef   : > { %1051 = vmatpush3.msra.mxu0 %v731_v10 }
 0x1f0   : > { %1052 = vmatprep.subr.mxu0 %v1191_v7 }
 0x1f1   : > { %1053 = vmatpush3.msra.mxu0 %v730_v11 }
 0x1f2   : > { %1054 = vmatprep.subr.mxu0 %v1191_v7 }
 0x1f3   : > { %1055 = vmatpush3.msra.mxu0 %v729_v12 }
 0x1f4   : > { %1056 = vmatprep.subr.mxu0 %v1191_v7 }
 0x1f5   : > { %1057 = vmatpush3.msra.mxu0 %v728_v13 }
 0x1f6   : > { %1058 = vmatprep.subr.mxu0 %v1191_v7 }
 0x1f7   : > { %1059 = vmatpush3.msra.mxu0 %v727_v14 }
 0x1f8   : > { %1060 = vmatprep.subr.mxu0 %v1191_v7 }
 0x1f9   : > { %1061 = vmatpush3.msra.mxu0 %v726_v15 }
 0x1fa   : > { %1062 = vmatprep.subr.mxu0 %v1191_v7 }
 0x1fb   : > { %1063 = vmatpush3.msra.mxu0 %v725_v16 }
 0x1fc   : > { %1064 = vmatprep.subr.mxu0 %v1191_v7 }
 0x1fd   : > { %1065 = vmatpush3.msra.mxu0 %v724_v17 }
 0x1fe   : > { %1066 = vmatprep.subr.mxu0 %v1191_v7 }
 0x1ff   : > { %1067 = vmatpush3.msra.mxu0 %v723_v18 }
 0x200   : > { %1068 = vmatprep.subr.mxu0 %v1191_v7 }
 0x201   : > { %1069 = vmatpush3.msra.mxu0 %v722_v19 }
 0x202   : > { %1070 = vmatprep.subr.mxu0 %v1191_v7 }
 0x203   : > { %1071 = vmatpush3.msra.mxu0 %v721_v20 }
 0x204   : > { %1072 = vmatprep.subr.mxu0 %v1191_v7 }
 0x205   : > { %1073 = vmatpush3.msra.mxu0 %v720_v21 }
 0x206   : > { %1075 = vmatmul.mubr.f32.vlgmr.msra.gmra.mxu0 %v718_v9 }
 0x2c6   : > { %v809_v23 = vpop.f32.mrf.mxu0 }
 0x2c7   : > { %v810_v24 = vadd.f32 %v929_v22, %v809_v23 }
 0x2c8   : > { %v1076_v25 = vpop.f32.mrf.mxu0 }
 0x2c9   : > { %v813_v26 = vmax.f32 %v810_v24, 0.0 }
 0x2cb   : > { %814 = vst [vmem:[#allocation5] sm:$0x3] %v813_v26 }
 0x2cc PF: > { %p1089_p6 = scmp.eq.s32.totalorder %s1236_s22, 1  ;;  %s1193_s25 = smov [#allocation3]  }
 0x2cd   : > { %s822_s26 = sshll.u32 %s1193_s25, 4  ;;  %s1194_s27 = smov [#allocation5]   ;;  %s823_s26 = int_to_ptr.vmem [resolvable:$true] %s822_s26 }
 0x2ce   : > { %s833_s28 = sshll.u32 %s1194_s27, 4  ;;  %s1125_s29 = scalar_lea.vmem %s823_s26, 32  ;;  %s834_s28 = int_to_ptr.vmem [resolvable:$true] %s833_s28 }
 0x2cf   : > { %p1126_p7 = scmp.ne.s32.totalorder %s823_s26, %s1125_s29  ;;  %p1132_p10 = scmp.lt.s32.totalorder %s823_s26, %s823_s26 }
 0x2d0   : > { %p1133_p11 = scmp.lt.s32.totalorder %s1125_s29, %s1125_s29 }
 0x2d1   : > { %p1127_p8 = pnand %p1126_p7, %p1089_p6 }
 0x2d2   : > { %p1134_p12 = por %p1133_p11, %p1132_p10 }
 0x2d3   : > { %p1128_p9 = pneg %p1127_p8 }
 0x2d5   : > { %p1135_p13 = pnand %p1134_p12, %p1128_p9 }
 0x2d7   : > { %1138 = shalt.err (!%p1135_p13)
}
 0x2d8   : > { %1082 = dma.vmem_to_hbm [thread:$0]  (%p1089_p6), %s823_s26, 32, %s1456_s5, [#allocation4]  }
 0x2d9   : > { %s1149_s8 = scalar_lea.vmem %s834_s28, 32  ;;  %p1156_p3 = scmp.lt.s32.totalorder %s834_s28, %s834_s28 }
 0x2da   : > { %p1150_p0 = scmp.ne.s32.totalorder %s834_s28, %s1149_s8  ;;  %p1157_p4 = scmp.lt.s32.totalorder %s1149_s8, %s1149_s8 }
 0x2dc   : > { %p1151_p1 = pnand %p1150_p0, %p1089_p6  ;;  %p1158_p5 = por %p1157_p4, %p1156_p3 }
 0x2de   : > { %p1152_p2 = pneg %p1151_p1 }
 0x2e0   : > { %p1159_p7 = pnand %p1158_p5, %p1152_p2 }
 0x2e2   : > { %1162 = shalt.err (!%p1159_p7)
}
 0x2e3   : > { %1084 = dma.vmem_to_hbm [thread:$0]  (%p1089_p6), %s834_s28, 32, %s1457_s6, [#allocation6]  }
 0x2e4   : > { %1178 = dma.done.wait (%p1089_p6), [#allocation4], 32  }
 0x2e5   : > { %1180 = vsyncadd (%p1089_p6), [#allocation4], 4294967264 }
 0x2e6   : > { %1182 = dma.done.wait (%p1089_p6), [#allocation6], 32  }
 0x2e7   : > { %1184 = vsyncadd (%p1089_p6), [#allocation6], 4294967264 }
 0x2e8 PF: > { %s19_s21 = sadd.s32 1, %s1187_s21  }
 0x2e9   : > { %p16_p8 = scmp.ge.s32.totalorder %s19_s21, 4  }
 0x2eb   :  { %18 = sbr.rel (!%p16_p8) target bundleno = 2 (0x2), region = 83 }
 0x2f0   :  { %850 = vsyncpa [#allocation4], 1 }
 0x2f1   :  { %852 = vsyncpa [#allocation4 + $0x1], 1 }
 0x2f2   :  { %853 = vsyncpa [#allocation6], 1 }

</bundles_post_ra>
